<compile_context>
chip_gen: v5e
topology: v5e:2x2
jax: 0.10.0
libtpu: 0.0.40
codegen_flags: <defaults>
</compile_context>

<pallas_src>
import functools

import jax
import jax.numpy as jnp
from jax import lax
from jax.experimental import pallas as pl
from jax.experimental.pallas import tpu as pltpu


# Keep the scoped-VMEM request within every generation's physical capacity
# (v7x has only 64 MiB per TensorCore).
_VMEM_LIMIT_BYTES = 64 * 1024 * 1024


def _tile(dim, preferred, align):
    """Pick a block size: full dim if small/unaligned, else the largest
    multiple of `align` that divides `dim`, capped at `preferred`."""
    if dim <= preferred or dim % align != 0:
        return dim
    t = preferred - (preferred % align)
    while dim % t != 0:
        t -= align
    return t


# ---------------------------------------------------------------------------
# Stage 1 / 3: batched tiled linear  y[p] = x[p] @ w[p] + b[p]
# ---------------------------------------------------------------------------
def _linear_kernel(x_ref, w_ref, b_ref, o_ref, acc_ref):
    @pl.when(pl.program_id(3) == 0)
    def _():
        acc_ref[...] = jnp.zeros_like(acc_ref)

    acc_ref[...] += jnp.dot(x_ref[0], w_ref[0],
                            preferred_element_type=jnp.float32)

    @pl.when(pl.program_id(3) == pl.num_programs(3) - 1)
    def _():
        o_ref[0] = (acc_ref[...] + b_ref[0]).astype(o_ref.dtype)


def _batched_linear(x, w, b, *, tm_pref=256, tn_pref=256, tk_pref=256):
    """x: (P, M, K), w: (P, K, N), b: (P, 1, N) -> (P, M, N)."""
    P, M, K = x.shape
    N = w.shape[-1]
    tm = _tile(M, tm_pref, 8)      # second-to-last dims: 8-aligned
    tn = _tile(N, tn_pref, 128)    # lane dims: 128-aligned
    tk = _tile(K, tk_pref, 128)
    grid = (P, M // tm, N // tn, K // tk)   # reduction axis last

    return pl.pallas_call(
        _linear_kernel,
        out_shape=jax.ShapeDtypeStruct((P, M, N), x.dtype),
        grid_spec=pltpu.PrefetchScalarGridSpec(
            num_scalar_prefetch=0,
            grid=grid,
            in_specs=[
                pl.BlockSpec((1, tm, tk), lambda p, m, n, k: (p, m, k)),
                pl.BlockSpec((1, tk, tn), lambda p, m, n, k: (p, k, n)),
                pl.BlockSpec((1, 1, tn), lambda p, m, n, k: (p, 0, n)),
            ],
            out_specs=pl.BlockSpec((1, tm, tn), lambda p, m, n, k: (p, m, n)),
            scratch_shapes=[pltpu.VMEM((tm, tn), jnp.float32)],
        ),
        compiler_params=pltpu.CompilerParams(
            dimension_semantics=("parallel", "parallel", "parallel", "arbitrary"),
            vmem_limit_bytes=_VMEM_LIMIT_BYTES,
        ),
    )(x, w, b)


# ---------------------------------------------------------------------------
# Stage 2: per-(batch, head) scaled dot-product attention
# ---------------------------------------------------------------------------
def _attn_kernel(q_ref, k_ref, v_ref, ctx_ref, attn_ref, *, scale):
    q = q_ref[0, 0] * scale          # scale folded into Q: O(N*Dh), not O(N^2)
    k = k_ref[0, 0]
    v = v_ref[0, 0]

    # scores = q @ k^T without an explicit transpose (contract last dims).
    s = lax.dot_general(q, k, (((1,), (1,)), ((), ())),
                        preferred_element_type=jnp.float32)      # (N, N)

    # Numerically stable softmax; divide via the EUP approximate reciprocal.
    m = jnp.max(s, axis=-1, keepdims=True)
    e = jnp.exp(s - m)
    denom = jnp.sum(e, axis=-1, keepdims=True)
    p = e * pl.reciprocal(denom, approx=True)

    attn_ref[0, 0] = p.astype(attn_ref.dtype)                    # one full store
    ctx_ref[0, 0] = jnp.dot(p.astype(v.dtype), v,
                            preferred_element_type=jnp.float32
                            ).astype(ctx_ref.dtype)


def _attention(q4, k4, v4, *, scale):
    """q4/k4/v4: (B, H, N, Dh) -> ctx (B, H, N, Dh), attn (B, H, N, N)."""
    B, H, N, Dh = q4.shape
    head_spec = pl.BlockSpec((1, 1, N, Dh), lambda b, h: (b, h, 0, 0))

    return pl.pallas_call(
        functools.partial(_attn_kernel, scale=scale),
        out_shape=(
            jax.ShapeDtypeStruct((B, H, N, Dh), q4.dtype),
            jax.ShapeDtypeStruct((B, H, N, N), jnp.float32),
        ),
        grid_spec=pltpu.PrefetchScalarGridSpec(
            num_scalar_prefetch=0,
            grid=(B, H),
            in_specs=[head_spec, head_spec, head_spec],
            out_specs=[
                pl.BlockSpec((1, 1, N, Dh), lambda b, h: (b, h, 0, 0)),
                pl.BlockSpec((1, 1, N, N), lambda b, h: (b, h, 0, 0)),
            ],
        ),
        compiler_params=pltpu.CompilerParams(
            dimension_semantics=("parallel", "parallel"),
            vmem_limit_bytes=_VMEM_LIMIT_BYTES,
        ),
    )(q4, k4, v4)


# ---------------------------------------------------------------------------
# Full forward pass
# ---------------------------------------------------------------------------
def mha_forward(query, key, value, params, *, num_heads):
    B, N, E = query.shape
    head_dim = E // num_heads
    scale = float(head_dim) ** (-0.5)
    wq, bq, wk, bk, wv, bv, wo, bo = params

    # Stage 1: Q/K/V projections as one batched tiled GEMM (big MXU tiles).
    x3 = jnp.stack([query.reshape(B * N, E),
                    key.reshape(B * N, E),
                    value.reshape(B * N, E)])                    # (3, B*N, E)
    w3 = jnp.stack([wq, wk, wv])                                 # (3, E, E)
    b3 = jnp.stack([bq, bk, bv])                                 # (3, 1, E)
    qkv = _batched_linear(x3, w3, b3)                            # (3, B*N, E)

    def to_heads(x2d):
        return x2d.reshape(B, N, num_heads, head_dim).transpose(0, 2, 1, 3)

    q4, k4, v4 = to_heads(qkv[0]), to_heads(qkv[1]), to_heads(qkv[2])

    # Stage 2: attention core, gridded over (batch, head).
    ctx4, attn = _attention(q4, k4, v4, scale=scale)

    # Stage 3: output projection as another big tiled GEMM.
    ctx2 = ctx4.transpose(0, 2, 1, 3).reshape(B * N, E)
    out = _batched_linear(ctx2[None], wo[None], bo[None])[0].reshape(B, N, E)
    return out, attn


# ---------------------------------------------------------------------------
# Pure-JAX reference (mirrors the PyTorch forward exactly)
# ---------------------------------------------------------------------------
def mha_reference(query, key, value, params, *, num_heads):
    B, N, E = query.shape
    head_dim = E // num_heads
    scale = float(head_dim) ** (-0.5)
    wq, bq, wk, bk, wv, bv, wo, bo = params

    def proj(x, w, b):
        return x @ w + b  # w is (in, out)

    q = proj(query, wq, bq).reshape(B, N, num_heads, head_dim).transpose(0, 2, 1, 3)
    k = proj(key, wk, bk).reshape(B, N, num_heads, head_dim).transpose(0, 2, 1, 3)
    v = proj(value, wv, bv).reshape(B, N, num_heads, head_dim).transpose(0, 2, 1, 3)

    scores = jnp.einsum("bhnd,bhmd->bhnm", q, k) * scale
    attn = jax.nn.softmax(scores, axis=-1)
    out = jnp.einsum("bhnm,bhmd->bhnd", attn, v)
    out = out.transpose(0, 2, 1, 3).reshape(B, N, E)
    out = out @ wo + bo
    return out, attn


def init_params(key, embed_dim):
    """Deterministic init; weights stored as (in, out), biases as (1, out)."""
    ks = jax.random.split(key, 8)
    lim = 1.0 / (embed_dim ** 0.5)

    def w(k):
        return jax.random.uniform(k, (embed_dim, embed_dim), jnp.float32, -lim, lim)

    def b(k):
        return jax.random.uniform(k, (1, embed_dim), jnp.float32, -lim, lim)

    return (w(ks[0]), b(ks[1]),   # query
            w(ks[2]), b(ks[3]),   # key
            w(ks[4]), b(ks[5]),   # value
            w(ks[6]), b(ks[7]))   # fc_out


if __name__ == "__main__":
    B, N, E, H = 2, 8, 32, 4  # batch, seq, embed_dim, num_heads

    root = jax.random.PRNGKey(0)
    k_q, k_k, k_v, k_p = jax.random.split(root, 4)

    query = jax.random.normal(k_q, (B, N, E), jnp.float32)
    key = jax.random.normal(k_k, (B, N, E), jnp.float32)
    value = jax.random.normal(k_v, (B, N, E), jnp.float32)
    params = init_params(k_p, E)

    out, attn = mha_forward(query, key, value, params, num_heads=H)
    out = jax.block_until_ready(out)
    attn = jax.block_until_ready(attn)

    ref_out, ref_attn = mha_reference(query, key, value, params, num_heads=H)
    assert out.shape == (B, N, E) and attn.shape == (B, H, N, N)
    # Tolerances account for the EUP approximate reciprocal in the softmax.
    assert jnp.allclose(out, ref_out, atol=2e-3, rtol=2e-3)
    assert jnp.allclose(attn, ref_attn, atol=2e-3, rtol=2e-3)

    print("KERNEL_OK")
</pallas_src>

<mosaic_0001>
module attributes {stable_mosaic.version = 11 : i64} {
  func.func @_linear_kernel(%arg0: i32, %arg1: i32, %arg2: i32, %arg3: i32, %arg4: memref<1x16x32xf32, #tpu.memory_space<vmem>>, %arg5: memref<1x32x32xf32, #tpu.memory_space<vmem>>, %arg6: memref<1x1x32xf32, #tpu.memory_space<vmem>>, %arg7: memref<1x16x32xf32, #tpu.memory_space<vmem>>, %arg8: memref<16x32xf32, #tpu.memory_space<vmem>>) attributes {dimension_semantics = [#tpu.dimension_semantics<parallel>, #tpu.dimension_semantics<parallel>, #tpu.dimension_semantics<parallel>, #tpu.dimension_semantics<arbitrary>], iteration_bounds = array<i64: 3, 1, 1, 1>, scalar_prefetch = 0 : i64, scratch_operands = 1 : i64, tpu.core_type = #tpu.core_type<tc>, window_params = [{transform_indices = @transform_0, window_bounds = array<i64: 1, 16, 32>}, {transform_indices = @transform_1, window_bounds = array<i64: 1, 32, 32>}, {transform_indices = @transform_2, window_bounds = array<i64: 1, 1, 32>}, {transform_indices = @transform_3, window_bounds = array<i64: 1, 16, 32>}]} {
    %c0_i32 = arith.constant 0 : i32
    %0 = arith.cmpi eq, %arg3, %c0_i32 : i32
    %1 = arith.extui %0 : i1 to i32
    %c0_i32_0 = arith.constant 0 : i32
    %2 = arith.cmpi ne, %1, %c0_i32_0 : i32
    scf.if %2 {
      %cst_12 = arith.constant 0.000000e+00 : f32
      %14 = vector.broadcast %cst_12 : f32 to vector<16x32xf32>
      %c0_13 = arith.constant 0 : index
      %c0_14 = arith.constant 0 : index
      %15 = vector.load %arg8[%c0_13, %c0_14] : memref<16x32xf32, #tpu.memory_space<vmem>>, vector<16x32xf32>
      tpu.vector_store %arg8[%c0_13, %c0_14], %14 {strides = array<i32>} : memref<16x32xf32, #tpu.memory_space<vmem>>, vector<16x32xf32>,
    } else {
    }
    %c0 = arith.constant 0 : index
    %c0_1 = arith.constant 0 : index
    %3 = vector.load %arg8[%c0, %c0_1] : memref<16x32xf32, #tpu.memory_space<vmem>>, vector<16x32xf32>
    %c0_2 = arith.constant 0 : index
    %c0_3 = arith.constant 0 : index
    %c0_4 = arith.constant 0 : index
    %4 = vector.load %arg4[%c0_2, %c0_3, %c0_4] : memref<1x16x32xf32, #tpu.memory_space<vmem>>, vector<1x16x32xf32>
    %5 = vector.shape_cast %4 : vector<1x16x32xf32> to vector<16x32xf32>
    %c0_5 = arith.constant 0 : index
    %c0_6 = arith.constant 0 : index
    %c0_7 = arith.constant 0 : index
    %6 = vector.load %arg5[%c0_5, %c0_6, %c0_7] : memref<1x32x32xf32, #tpu.memory_space<vmem>>, vector<1x32x32xf32>
    %7 = vector.shape_cast %6 : vector<1x32x32xf32> to vector<32x32xf32>
    %cst = arith.constant dense<0.000000e+00> : vector<16x32xf32>
    %8 = tpu.matmul %5, %7, %cst {dimension_numbers = #tpu.dot_dimension_numbers<[1], [0], [0], [1], [0, 0, 1, 1], [], []>} : vector<16x32xf32>, vector<32x32xf32>, vector<16x32xf32> -> vector<16x32xf32>
    %9 = arith.addf %3, %8 : vector<16x32xf32>
    %c0_8 = arith.constant 0 : index
    %c0_9 = arith.constant 0 : index
    %10 = vector.load %arg8[%c0_8, %c0_9] : memref<16x32xf32, #tpu.memory_space<vmem>>, vector<16x32xf32>
    tpu.vector_store %arg8[%c0_8, %c0_9], %9 {strides = array<i32>} : memref<16x32xf32, #tpu.memory_space<vmem>>, vector<16x32xf32>,
    %c0_i32_10 = arith.constant 0 : i32
    %11 = arith.cmpi eq, %arg3, %c0_i32_10 : i32
    %12 = arith.extui %11 : i1 to i32
    %c0_i32_11 = arith.constant 0 : i32
    %13 = arith.cmpi ne, %12, %c0_i32_11 : i32
    scf.if %13 {
      %c0_12 = arith.constant 0 : index
      %c0_13 = arith.constant 0 : index
      %14 = vector.load %arg8[%c0_12, %c0_13] : memref<16x32xf32, #tpu.memory_space<vmem>>, vector<16x32xf32>
      %c0_14 = arith.constant 0 : index
      %c0_15 = arith.constant 0 : index
      %c0_16 = arith.constant 0 : index
      %15 = vector.load %arg6[%c0_14, %c0_15, %c0_16] : memref<1x1x32xf32, #tpu.memory_space<vmem>>, vector<1x1x32xf32>
      %16 = vector.shape_cast %15 : vector<1x1x32xf32> to vector<1x32xf32>
      %17 = vector.broadcast %16 : vector<1x32xf32> to vector<16x32xf32>
      %18 = arith.addf %14, %17 : vector<16x32xf32>
      %c0_17 = arith.constant 0 : index
      %c0_18 = arith.constant 0 : index
      %c0_19 = arith.constant 0 : index
      %19 = vector.load %arg7[%c0_17, %c0_18, %c0_19] : memref<1x16x32xf32, #tpu.memory_space<vmem>>, vector<1x16x32xf32>
      %20 = vector.shape_cast %19 : vector<1x16x32xf32> to vector<16x32xf32>
      %21 = vector.shape_cast %18 : vector<16x32xf32> to vector<1x16x32xf32>
      tpu.vector_store %arg7[%c0_17, %c0_18, %c0_19], %21 {strides = array<i32>} : memref<1x16x32xf32, #tpu.memory_space<vmem>>, vector<1x16x32xf32>,
    } else {
    }
    return
  }
  func.func @transform_0(%arg0: i32, %arg1: i32, %arg2: i32, %arg3: i32) -> (i32, i32, i32) {
    %c0_i32 = arith.constant 0 : i32
    return %arg0, %arg1, %arg3 : i32, i32, i32
  }
  func.func @transform_1(%arg0: i32, %arg1: i32, %arg2: i32, %arg3: i32) -> (i32, i32, i32) {
    %c0_i32 = arith.constant 0 : i32
    return %arg0, %arg3, %arg2 : i32, i32, i32
  }
  func.func @transform_2(%arg0: i32, %arg1: i32, %arg2: i32, %arg3: i32) -> (i32, i32, i32) {
    %c0_i32 = arith.constant 0 : i32
    %c0_i32_0 = arith.constant 0 : i32
    return %arg0, %c0_i32, %arg2 : i32, i32, i32
  }
  func.func @transform_3(%arg0: i32, %arg1: i32, %arg2: i32, %arg3: i32) -> (i32, i32, i32) {
    %c0_i32 = arith.constant 0 : i32
    return %arg0, %arg1, %arg2 : i32, i32, i32
  }
}

</mosaic_0001>

<bundles_post_ra>
// kernel: tpu_custom_call.1
= control target key start
LH: loop header
LB: loop body
LE: loop exit
PB: predicated region body
PF: predicated region fallthrough
CT: control target
= control target key end

     0   :  { %s1010_s0 = inlined_call_operand.hbm [shape: f32[3,16,32], index: 0, kind: input, shape index: {}]   ;;  %s1011_s1 = inlined_call_operand.hbm [shape: f32[3,32,32], index: 1, kind: input, shape index: {}]   ;;  %s1012_s2 = inlined_call_operand.hbm [shape: f32[3,1,32], index: 2, kind: input, shape index: {}]   ;;  %s1013_s3 = inlined_call_operand.hbm [shape: f32[3,16,32], index: 3, kind: output, shape index: {}]  }
   0x1   :  { %1018 = sst [smem:[#allocation18_spill]] %s1011_s1 }
   0x2   :  { %8 = vsyncpa [#allocation4], 0 }
   0x3   :  { %10 = vsyncpa [#allocation4 + $0x1], 0 }
   0x4   :  { %11 = vsyncpa [#allocation7], 0 }
   0x5   :  { %13 = vsyncpa [#allocation7 + $0x1], 0 }
   0x6   :  { %14 = vsyncpa [#allocation5], 0 }
   0x7   :  { %16 = vsyncpa [#allocation5 + $0x1], 0  ;;  %s844_s12 = smov 0   ;;  %s846_s13 = smov 0  }
   0x8   :  { %s848_s14 = smov 0   ;;  %s850_s15 = smov 0  }
   0x9   :  { %s852_s16 = smov 0   ;;  %s854_s17 = smov 0  }
   0xa LB: > { %1019 = sst [smem:[#allocation13_spill]] %s797_s12  ;;  %s875_s18 = sadd.s32 4294967295, %s817_s17   ;;  %s817_s17 = sphi %s854_s17, %s22_s17   ;;  %s813_s16 = sphi %s852_s16, %s1038_s16   ;;  %s809_s15 = sphi %s850_s15, %s1037_s15   ;;  %s805_s14 = sphi %s848_s14, %s1033_s14   ;;  %s801_s13 = sphi %s846_s13, %s1036_s13   ;;  %s797_s12 = sphi %s844_s12, %s1035_s12  }
   0xb   : > { %1020 = sst [smem:[#allocation14_spill]] %s805_s14  ;;  %s536_s19 = sadd.s32 4294967294, %s817_s17  }
   0xc   : > { %s48_s20 = sadd.s32 1, %s813_s16  ;;  %s59_s21 = sadd.s32 1, %s805_s14 }
   0xd   : > { %p50_p0 = scmp.ge.s32.totalorder %s48_s20, 3  ;;  %p66_p1 = scmp.ne.s32.totalorder %s805_s14, %s801_s13 }
   0xe   : > { %p67_p2 = scmp.eq.s32.totalorder %s817_s17, 0  ;;  %p72_p3 = scmp.ne.s32.totalorder %s801_s13, %s797_s12 }
   0xf   : > { %s1040_s20 = smov (%p50_p0, %s48_s20), 0  ;;  %p73_p5 = scmp.eq.s32.totalorder %s875_s18, 0 }
  0x10   : > { %1021 = sst [smem:[#allocation15_spill]] %s1040_s20  ;;  %p68_p4 = por %p67_p2, %p66_p1 }
  0x11   : > { %s52_s22 = ssub.s32 %s813_s16, %s1040_s20  ;;  %p158_p6 = scmp.eq.s32.totalorder %s875_s18, 2 }
  0x12   : > { %p57_p7 = scmp.eq.s32.totalorder %s52_s22, 0  ;;  %p891_p8 = por %p73_p5, %p72_p3 }
  0x13   : > { %p895_p9 = por %p158_p6, %p66_p1  ;;  %p164_p10 = scmp.eq.s32.totalorder %s536_s19, 2 }
  0x14   : > { %s900_s25 = scalar_select %p57_p7, %s805_s14, %s59_s21  }
  0x15   : > { %p902_p11 = por %p164_p10, %p72_p3  ;;  %p585_p12 = scmp.lt.s32.totalorder %s817_s17, 3 }
  0x16   : > { %1024 = sst [smem:[#allocation16_spill]] %s900_s25  ;;  %s908_s27 = sand.u32 1, %s805_s14  }
  0x17   : > { %s1025_s26 = scalar_select %p902_p11, 1, 0 }
  0x18   : > { %p910_p13 = pnand %p585_p12, %p68_p4  ;;  %s209_s29 = sand.u32 1, %s817_s17  }
  0x19   : > { %1026 = sst [smem:[#allocation17_spill]] %s1025_s26  ;;  %s542_s30 = sshll.u32 %s908_s27, 5 }
  0x1a   : > { %s557_s4 = sshll.u32 %s813_s16, 5  ;;  %s213_s5 = scalar_lea.vmem [#allocation6], %s542_s30 }
  0x1b   : > { %s224_s6 = sshll.u32 %s213_s5, 4  ;;  %s1028_s1 = sld [smem:[#allocation18_spill]]  ;;  %s225_s6 = int_to_ptr.vmem [resolvable:$true] %s224_s6 }
  0x1c   : > { %p545_p0 = scmp.ge.s32.totalorder %s817_s17, 1  ;;  %p250_p1 = scmp.lt.s32.totalorder %s817_s17, 4 }
  0x1d   : > { %s210_s11 = scalar_lea.sflag [#allocation7], %s209_s29  ;;  %s819_s19 = smov 128  }
  0x1e   : > { %s820_s21 = smov 8   ;;  %p924_p2 = pnand %p545_p0, %p250_p1 }
  0x1f   : > { %s539_s30 = sshll.u32 %s908_s27, 4  ;;  %s185_s29 = scalar_lea.sflag [#allocation4], %s908_s27 }
  0x20   : > { %s241_s25 = scalar_lea.hbm %s1012_s2, %s813_s16  ;;  %s237_s26 = scalar_lea.vmem [#allocation8], %s908_s27 }
  0x21   : > { %s221_s9 = scalar_lea.hbm %s1028_s1, %s557_s4  ;;  %s556_s4 = sshll.u32 %s813_s16, 4 }
  0x22   : > { %s222_s10 = sshll.u32 %s221_s9, 4  ;;  %s196_s8 = scalar_lea.hbm %s1010_s0, %s556_s4  ;;  %s223_s10 = int_to_ptr.hbm [resolvable:$true] %s222_s10 }
  0x23   : > { %577 = dma.hbm_to_vmem [thread:$0]  (!%p910_p13), %s223_s10, 512, %s225_s6, %s210_s11, %s819_s19, %s819_s19, %s820_s21  }
  0x24   : > { %s197_s9 = sshll.u32 %s196_s8, 4  ;;  %s188_s1 = scalar_lea.vmem [#allocation3], %s539_s30  ;;  %s198_s9 = int_to_ptr.hbm [resolvable:$true] %s197_s9 }
  0x25   : > { %s199_s20 = sshll.u32 %s188_s1, 4  ;;  %s243_s14 = sshll.u32 %s241_s25, 4  ;;  %s200_s20 = int_to_ptr.vmem [resolvable:$true] %s199_s20  ;;  %s244_s14 = int_to_ptr.hbm [resolvable:$true] %s243_s14 }
  0x26   : > { %574 = dma.hbm_to_vmem [thread:$0]  (!%p910_p13), %s198_s9, 256, %s200_s20, %s185_s29, %s819_s19, %s819_s19, %s820_s21  }
  0x27   : > { %s245_s12 = sshll.u32 %s237_s26, 4  ;;  %254 = sbr.rel (%p924_p2) target bundleno = 199 (0xc7), region = 32  ;;  %s246_s12 = int_to_ptr.vmem [resolvable:$true] %s245_s12 }
  0x28   : > { %580 = dma.hbm_to_vmem [thread:$0]  (!%p910_p13), %s244_s14, 16, %s246_s12, %s210_s11  }
  0x29   : > { %s946_s1 = sand.u32 (!%p924_p2), 1, %s801_s13  }
  0x2a   : > { %s546_s20 = sshll.u32 (!%p924_p2), %s946_s1, 4  ;;  %s257_s19 = scalar_lea.sflag (!%p924_p2), [#allocation4], %s946_s1 }
  0x2b   : > { %s260_s25 = scalar_lea.vmem (!%p924_p2), [#allocation3], %s546_s20 }
  0x2c   : > { %784 = dma.done.wait (%p891_p8), %s257_s19, 256  }
  0x2d   : > { %786 = vsyncadd (%p891_p8), %s257_s19, 4294967040  ;;  %s266_s12 = sand.u32 1, %s875_s18   ;;  %s547_s14 = sshll.u32 %s946_s1, 5 }
  0x2e   : > { %s267_s26 = scalar_lea.sflag [#allocation7], %s266_s12  ;;  %s270_s27 = scalar_lea.vmem [#allocation6], %s547_s14 }
  0x2f   : > { %788 = dma.done.wait (%p891_p8), %s267_s26, 528  }
  0x30   : > { %790 = vsyncadd (%p891_p8), %s267_s26, 4294966768  ;;  %vm319_vm0 = vcmask 261120   ;;  %v821_v0 = vmov 0.0   ;;  %v329_v1 = vld [vmem:[%s270_s27 + $0x18] sm:$0xff]  ;;  %v328_v2 = vld [vmem:[%s270_s27 + $0x10] sm:$0xff]  ;;  %s279_s18 = scalar_lea.vmem [#allocation8], %s946_s1 }
  0x31   : > { %320 = vst.msk [vmem:[#allocation2] sm:$0xff] %vm319_vm0, %v821_v0  ;;  %349 = vmatpush.msra.mxu0 %v329_v1  ;;  %559 = vmatpush.msra.mxu1 %v329_v1  ;;  %v327_v3 = vld [vmem:[%s270_s27 + $0x8] sm:$0xff]  ;;  %v326_v4 = vld [vmem:[%s270_s27] sm:$0xff]  ;;  %s558_s23 = sshll.u32 %s809_s15, 4  ;;  %v640_v13 = vld [vmem:[%s279_s18] ss:$0 sm:$0xff] }
  0x32   : > { %321 = vst.msk [vmem:[#allocation2 + $0x8] sm:$0xff] %vm319_vm0, %v821_v0  ;;  %v324_v5 = vld [vmem:[%s260_s25] sm:$0xff]  ;;  %v325_v6 = vld [vmem:[%s260_s25 + $0x8] sm:$0xff]  ;;  %s392_s21 = scalar_lea.hbm %s1013_s3, %s558_s23  ;;  %s311_s22 = scalar_lea.vmem [#allocation9], %s546_s20 }
  0x33   : > { %350 = vmatpush.msra.mxu0 %v328_v2  ;;  %560 = vmatpush.msra.mxu1 %v328_v2  ;;  %s393_s30 = sshll.u32 %s311_s22, 4  ;;  %s395_s4 = sshll.u32 %s392_s21, 4  ;;  %s394_s30 = int_to_ptr.vmem [resolvable:$true] %s393_s30  ;;  %s396_s4 = int_to_ptr.hbm [resolvable:$true] %s395_s4 }
  0x34   : > { %s378_s15 = scalar_lea.sflag [#allocation5], %s946_s1  ;;  %s745_s5 = sshra.s32 %s396_s4, 4  ;;  %s746_s5 = int_to_ptr.hbm [resolvable:$true] %s745_s5 }
  0x35   : > { %351 = vmatpush.msra.mxu0 %v327_v3  ;;  %561 = vmatpush.msra.mxu1 %v327_v3  ;;  %s747_s7 = scalar_lea.hbm %s746_s5, 16  ;;  %s751_s29 = scalar_lea.hbm %s1013_s3, 48 }
  0x36   : > { %p748_p3 = scmp.ne.s32.totalorder %s746_s5, %s747_s7  ;;  %p752_p6 = scmp.lt.s32.totalorder %s746_s5, %s1013_s3 }
  0x37   : > { %352 = vmatpush.msra.mxu0 %v326_v4  ;;  %562 = vmatpush.msra.mxu1 %v326_v4  ;;  %p753_p7 = scmp.lt.s32.totalorder %s751_s29, %s747_s7 }
  0x38   : > { %549 = vmatmul.msk.f32.vlgmr.msra.gmra.mxu0 %vm319_vm0, %v324_v5  ;;  %550 = vmatmul.msk.f32.vlgmr.msra.gmra.mxu1 %vm319_vm0, %v325_v6  ;;  %v322_v7 = vld [vmem:[#allocation2] sm:$0xff]  ;;  %p749_p4 = pnand %p748_p3, %p895_p9 }
  0x39   : > { %v323_v8 = vld [vmem:[#allocation2 + $0x8] sm:$0xff]  ;;  %p754_p8 = por %p753_p7, %p752_p6 }
  0x3a   : > { %p750_p5 = pneg %p749_p4 }
  0x3c   : > { %p755_p10 = pnand %p754_p8, %p750_p5 }
  0xb5   : > { %v354_v9 = vpop.f32.mrf.mxu0  ;;  %v357_v10 = vpop.f32.mrf.mxu1 }
  0xb6   : > { %v360_v11 = vadd.f32 %v354_v9, %v322_v7  ;;  %v361_v12 = vadd.f32 %v357_v10, %v323_v8 }
  0xb8   : > { %362 = vst.msk [vmem:[#allocation2] sm:$0xff] %vm319_vm0, %v360_v11 }
  0xb9   : > { %363 = vst.msk [vmem:[#allocation2 + $0x8] sm:$0xff] %vm319_vm0, %v361_v12 }
  0xbf   : > { %v367_v14 = vld [vmem:[#allocation2] sm:$0xff] }
  0xc0   : > { %v368_v15 = vld [vmem:[#allocation2 + $0x8] sm:$0xff]  ;;  %v373_v16 = vadd.f32 %v640_v13, %v367_v14 }
  0xc1   : > { %v374_v17 = vadd.f32 %v640_v13, %v368_v15 }
  0xc2   : > { %375 = vst.msk [vmem:[%s311_s22] sm:$0xff] %vm319_vm0, %v373_v16 }
  0xc3   : > { %376 = vst.msk [vmem:[%s311_s22 + $0x8] sm:$0xff] %vm319_vm0, %v374_v17 }
  0xc4   : > { %758 = shalt.err (!%p755_p10)
}
  0xc5   : > { %s822_s1 = smov 128   ;;  %s823_s20 = smov 8  }
  0xc6   : > { %569 = dma.vmem_to_hbm [thread:$0]  (%p895_p9), %s394_s30, 256, %s396_s4, %s378_s15, %s822_s1, %s822_s1, %s823_s20  }
  0xc7 PF: > { %s1030_s19 = sld [smem:[#allocation13_spill]]  ;;  %p586_p12 = scmp.ge.s32.totalorder %s817_s17, 2 }
  0xc9   : > { %p582_p13 = pnand %p586_p12, %p902_p11 }
  0xcb   : > { %p583_p0 = pneg %p582_p13 }
  0xcd   : > { %s410_s12 = sand.u32 1, %s1030_s19  }
  0xce   : > { %s411_s14 = scalar_lea.sflag [#allocation5], %s410_s12 }
  0xcf   : > { %792 = dma.done.wait (%p583_p0), %s411_s14, 256  }
  0xd0   : > { %794 = vsyncadd (%p583_p0), %s411_s14, 4294967040  ;;  %s22_s17 = sadd.s32 1, %s817_s17   ;;  %s1032_s26 = sld [smem:[#allocation14_spill]] }
  0xd1   : > { %p19_p1 = scmp.ge.s32.totalorder %s22_s17, 5   ;;  %s1033_s14 = sld [smem:[#allocation16_spill]] }
  0xd2   : > { %s1034_s24 = sld [smem:[#allocation15_spill]]  ;;  %s1035_s12 = smov %s801_s13 }
  0xd3   : > { %s1037_s15 = smov %s813_s16 }
  0xd4   :  { %21 = sbr.rel (!%p19_p1) target bundleno = 10 (0xa), region = 109 }
  0xd6   : > { %s1036_s13 = smov %s1032_s26 }
  0xd8   : > { %s1038_s16 = smov %s1034_s24 }
  0xd9   :  { %417 = vsyncpa [#allocation4], 1 }
  0xda   :  { %419 = vsyncpa [#allocation4 + $0x1], 1 }
  0xdb   :  { %420 = vsyncpa [#allocation7], 1 }
  0xdc   :  { %422 = vsyncpa [#allocation7 + $0x1], 1 }
  0xdd   :  { %423 = vsyncpa [#allocation5], 1 }
  0xde   :  { %425 = vsyncpa [#allocation5 + $0x1], 1 }

</bundles_post_ra>
